<compile_context>
chip_gen: v7x
topology: tpu7x:2x2x1
jax: 0.10.0
libtpu: 0.0.40
codegen_flags: <defaults>
</compile_context>

<pallas_src>
import functools

import jax
import jax.numpy as jnp
from jax.experimental import pallas as pl
from jax.experimental.pallas import tpu as pltpu


def birnn_lm_kernel(idsp_ref, m0_ref, wab_ref, b_ref, p_ref, decw_ref, decb_ref,
                    dec_ref, hid_ref, *, T, B, L):
    """Embedding + all SRU layers + tied decoder, fully VMEM-resident, no grid.

    idsp_ref : (T*B, 2)      i32  [ids | Vp + ids_time_reversed]
    m0_ref   : (2*Vp, 4*D)   f32  layer-0 fold: [enc-cols | enc @ W0_fused] for fwd & rev ids
    wab_ref  : (L-1, D, 6*D) f32  layers>=1: u = hout@Wab[:, :3D] + P@(hout@Wab[:, 3D:])
    b_ref    : (L, 1, 3*D)   f32  fused gate biases, cols [x0|x1 | f0|f1 | r0|r1]
    p_ref    : (T*B, T*B)    f32  time-reversal permutation (blocks of B rows)
    decw_ref : (D, 2*Vp)     f32  tied decoder with dir-1 un-reversal folded in
    decb_ref : (1, Vp)       f32  decoder bias (vocab padded to Vp)
    dec_ref  : (T*B, Vp)     f32  output logits (lane-dense)
    hid_ref  : (L*B, D)      f32  final SRU cell states per layer [c_dir0 | c_dir1]
    """
    D = b_ref.shape[-1] // 3
    Vp = decb_ref.shape[-1]
    TB = T * B

    # ---- layer 0: embedding gather + fwd/rev gate matmuls fused into ONE MXU op ----
    idsp = idsp_ref[...]                                           # (TB, 2) i32
    iota = jax.lax.broadcasted_iota(jnp.int32, (TB, 2 * Vp), 1)
    onehot = ((iota == idsp[:, 0:1]) | (iota == idsp[:, 1:2])).astype(jnp.float32)
    o0 = jnp.dot(onehot, m0_ref[...],
                 preferred_element_type=jnp.float32)               # (TB, 4D)
    xpf = o0[:, 0:D]                # fused highway input [emb_d0 fwd | emb_d1 rev]
    u = o0[:, D:4 * D] + b_ref[0]   # fused pre-activations [x | f | r], each (TB, D)
    p_mat = p_ref[...]

    hid_final = []
    for l in range(L):              # static unroll over layers
        xt = u[:, 0:D]
        gates = jax.nn.sigmoid(u[:, D:3 * D])        # one EUP push on the (TB, 2D) slab
        fg = gates[:, 0:D]
        rg = gates[:, D:2 * D]

        # serial part only: fused bidirectional c-recurrence, full width (B, D)
        c = jnp.zeros((B, D), jnp.float32)
        cs = []
        for t in range(T):          # static unroll over time (T small)
            lo = t * B
            x_t = xt[lo:lo + B]
            f_t = fg[lo:lo + B]
            c = (c - x_t) * f_t + x_t
            cs.append(c)
        hid_final.append(c)         # [c_dir0_final | c_dir1_final]

        # hoisted highway: one full-slab pass instead of per-step ops
        cslab = jnp.concatenate(cs, axis=0)           # (TB, D)
        hout = (cslab - xpf) * rg + xpf               # fused layout [dir0 fwd | dir1 rev]

        if l + 1 < L:
            # next layer's gates: the dir-1 time reversal is a single P-matmul on the MXU
            tmp = jnp.dot(hout, wab_ref[l],
                          preferred_element_type=jnp.float32)      # (TB, 6D)
            u = (tmp[:, 0:3 * D]
                 + jnp.dot(p_mat, tmp[:, 3 * D:6 * D],
                           preferred_element_type=jnp.float32)
                 + b_ref[l + 1])
            xpf = hout              # fused output IS the next layer's highway input
        else:
            # tied decoder: transpose + dir-1 un-reversal pre-folded into decw
            tmp = jnp.dot(hout, decw_ref[...],
                          preferred_element_type=jnp.float32)      # (TB, 2Vp)
            dec_ref[...] = (tmp[:, 0:Vp]
                            + jnp.dot(p_mat, tmp[:, Vp:2 * Vp],
                                      preferred_element_type=jnp.float32)
                            + decb_ref[...])

    hid_ref[...] = jnp.concatenate(hid_final, axis=0)              # single (L*B, D) store


def prepare_params(enc_w, sru_w, sru_b, dec_b, T, B):
    """One-time parameter preprocessing (hoisted out of the per-call jit)."""
    V, D = enc_w.shape
    L = sru_w.shape[0]
    d = D // 2
    Vp = max(128, ((V + 127) // 128) * 128)
    TB = T * B
    f32 = jnp.float32

    enc_pad = jnp.zeros((Vp, D), f32).at[:V].set(enc_w.astype(f32))

    def split6(a):  # last-dim blocks of width d: original layout [x0|f0|r0|x1|f1|r1]
        return [a[..., i * d:(i + 1) * d] for i in range(6)]

    # (D, 3D) weights producing fused gate columns [x0|x1 | f0|f1 | r0|r1]
    # (dir-1 columns are to be evaluated on the time-reversed input).
    Wtop, Wbot = [], []
    for l in range(L):
        x0, f0, r0, x1, f1, r1 = split6(sru_w[l].astype(f32))
        z = jnp.zeros_like(x0)
        Wtop.append(jnp.concatenate([x0, z, f0, z, r0, z], axis=-1))
        Wbot.append(jnp.concatenate([z, x1, z, f1, z, r1], axis=-1))

    bx0, bf0, br0, bx1, bf1, br1 = split6(sru_b.astype(f32))
    b_fused = jnp.concatenate([bx0, bx1, bf0, bf1, br0, br1], axis=-1)   # (L, 1, 3D)

    # Layer 0 fold: [xpf0 | u0_pre_bias] = double_onehot @ M0, with
    # double_onehot[i, ids[i]] = 1 and double_onehot[i, Vp + ids_rev[i]] = 1.
    zh = jnp.zeros((Vp, d), f32)
    m_fwd = jnp.concatenate([enc_pad[:, 0:d], zh, enc_pad @ Wtop[0]], axis=-1)
    m_rev = jnp.concatenate([zh, enc_pad[:, d:D], enc_pad @ Wbot[0]], axis=-1)
    M0 = jnp.concatenate([m_fwd, m_rev], axis=0)                          # (2Vp, 4D)

    # Layers 1..L-1: with hout = [A | B] (A fwd-time, B rev-time) the next-layer gates are
    #   u = hout @ Wa + rev(hout @ Wb),  Wa = [Wtop[:d]; Wbot[d:]],  Wb = [Wbot[:d]; Wtop[d:]]
    wab_list = []
    for l in range(1, L):
        wa = jnp.concatenate([Wtop[l][0:d, :], Wbot[l][d:D, :]], axis=0)
        wb = jnp.concatenate([Wbot[l][0:d, :], Wtop[l][d:D, :]], axis=0)
        wab_list.append(jnp.concatenate([wa, wb], axis=-1))               # (D, 6D)
    Wab = jnp.stack(wab_list, axis=0) if wab_list else jnp.zeros((1, D, 6 * D), f32)

    # Time-reversal permutation over blocks of B rows, applied via the MXU in-kernel.
    i = jnp.arange(TB)
    rev_idx = (T - 1 - i // B) * B + (i % B)
    P = jnp.zeros((TB, TB), f32).at[i, rev_idx].set(1.0)

    # Tied decoder, transpose + dir-1 un-reversal folded:
    #   decoded = tmp[:, :Vp] + P @ tmp[:, Vp:] + b,  tmp = hout @ DecW
    encT = enc_pad.T                                                       # (D, Vp)
    zv = jnp.zeros((d, Vp), f32)
    DecW = jnp.concatenate(
        [jnp.concatenate([encT[0:d], zv], axis=0),
         jnp.concatenate([zv, encT[d:D]], axis=0)], axis=-1)               # (D, 2Vp)

    decb_pad = jnp.zeros((1, Vp), f32).at[:, :V].set(dec_b.astype(f32))

    return dict(M0=M0, Wab=Wab, b=b_fused, P=P, DecW=DecW, decb=decb_pad,
                dims=(T, B, V, D, L, Vp))


@functools.partial(jax.jit, static_argnames=("dims",))
def _birnn_lm_call(x_ids, M0, Wab, b, P, DecW, decb, *, dims):
    T, B, V, D, L, Vp = dims
    TB = T * B
    ids = x_ids.reshape(TB).astype(jnp.int32)
    ids_rev = x_ids[::-1].reshape(TB).astype(jnp.int32)
    idsp = jnp.stack([ids, Vp + ids_rev], axis=-1)                        # (TB, 2)

    kernel = functools.partial(birnn_lm_kernel, T=T, B=B, L=L)
    dec_pad, hid_flat = pl.pallas_call(
        kernel,
        out_shape=(jax.ShapeDtypeStruct((TB, Vp), jnp.float32),
                   jax.ShapeDtypeStruct((L * B, D), jnp.float32)),
        in_specs=[pl.BlockSpec(memory_space=pltpu.MemorySpace.VMEM)] * 7,
        out_specs=(pl.BlockSpec(memory_space=pltpu.MemorySpace.VMEM),
                   pl.BlockSpec(memory_space=pltpu.MemorySpace.VMEM)),
    )(idsp, M0, Wab, b, P, DecW, decb)

    return dec_pad[:, :V], hid_flat.reshape(L, B, D)


def birnn_lm_forward(x_ids, params):
    return _birnn_lm_call(x_ids, params["M0"], params["Wab"], params["b"],
                          params["P"], params["DecW"], params["decb"],
                          dims=params["dims"])


def birnn_lm_reference(x_ids, enc_w, sru_w, sru_b, dec_b):
    """Pure-JAX reference of the same forward pass (original SRU column layout)."""
    emb = enc_w[x_ids]
    T, B, D = emb.shape
    L = sru_w.shape[0]
    d = D // 2
    h = emb
    hiddens = []
    for l in range(L):
        u = (h.reshape(T * B, D) @ sru_w[l] + sru_b[l]).reshape(T, B, 3 * D)
        xt0, f0, r0 = u[..., 0:d], jax.nn.sigmoid(u[..., d:2 * d]), jax.nn.sigmoid(u[..., 2 * d:3 * d])
        xt1, f1, r1 = u[..., 3 * d:4 * d], jax.nn.sigmoid(u[..., 4 * d:5 * d]), jax.nn.sigmoid(u[..., 5 * d:6 * d])
        xp0, xp1 = h[..., 0:d], h[..., d:D]
        c = jnp.zeros((B, d)); hs0 = []
        for t in range(T):
            c = (c - xt0[t]) * f0[t] + xt0[t]
            hs0.append((c - xp0[t]) * r0[t] + xp0[t])
        c0 = c
        c = jnp.zeros((B, d)); hs1 = [None] * T
        for t in range(T - 1, -1, -1):
            c = (c - xt1[t]) * f1[t] + xt1[t]
            hs1[t] = (c - xp1[t]) * r1[t] + xp1[t]
        c1 = c
        h = jnp.concatenate([jnp.stack(hs0, 0), jnp.stack(hs1, 0)], axis=-1)
        hiddens.append(jnp.concatenate([c0, c1], axis=-1))
    decoded = h.reshape(T * B, D) @ enc_w.T + dec_b
    return decoded, jnp.stack(hiddens, 0)


if __name__ == "__main__":
    # Small shapes consistent with the module's forward (x_input is (T, B) time-major).
    T, B = 8, 2                  # seq_len, batch
    D = 32                       # embedding_dim == hidden_dim (tie_weights)
    d = D // 2
    V = 64                       # num_words
    L = 2                        # n_layers
    highway_bias = -3.0

    key = jax.random.PRNGKey(0)
    k_emb, k_w, k_x = jax.random.split(key, 3)

    # init_weights(): encoder/decoder weight ~ U(-0.1, 0.1), decoder bias = 0 (tied weights).
    enc_w = jax.random.uniform(k_emb, (V, D), jnp.float32, -0.1, 0.1)
    dec_b = jnp.zeros((V,), jnp.float32)

    # SRU weights ~ U(-sqrt(3/n_in), sqrt(3/n_in)); bias zero except reset gates = highway_bias.
    # Original column layout per layer: [xtilde_d0 | f_d0 | r_d0 | xtilde_d1 | f_d1 | r_d1].
    val_range = (3.0 / D) ** 0.5
    sru_w = jax.random.uniform(k_w, (L, D, 3 * D), jnp.float32, -val_range, val_range)
    sru_b = jnp.zeros((L, 1, 3 * D), jnp.float32)
    sru_b = sru_b.at[:, :, 2 * d:3 * d].set(highway_bias)   # r gate, dir 0
    sru_b = sru_b.at[:, :, 5 * d:6 * d].set(highway_bias)   # r gate, dir 1

    x_ids = jax.random.randint(k_x, (T, B), 0, V, dtype=jnp.int32)

    # One-time parameter preprocessing (outside the per-call jit), full-f32 matmuls.
    with jax.default_matmul_precision("float32"):
        params = prepare_params(enc_w, sru_w, sru_b, dec_b, T, B)
        ref_dec, ref_hid = birnn_lm_reference(x_ids, enc_w, sru_w, sru_b, dec_b)

    decoded, hiddens = birnn_lm_forward(x_ids, params)
    decoded = jax.block_until_ready(decoded)
    hiddens = jax.block_until_ready(hiddens)

    assert decoded.shape == (T * B, V) and hiddens.shape == (L, B, D)
    # Tolerance allows for differing MXU accumulation order from the weight folding.
    assert jnp.allclose(decoded, ref_dec, atol=1e-3, rtol=1e-3), "decoder mismatch"
    assert jnp.allclose(hiddens, ref_hid, atol=1e-3, rtol=1e-3), "hidden-state mismatch"

    print("KERNEL_OK")
</pallas_src>

<mosaic_0001>
module attributes {stable_mosaic.version = 11 : i64} {
  func.func @birnn_lm_kernel(%arg0: memref<16x2xi32, #tpu.memory_space<vmem>>, %arg1: memref<256x128xf32, #tpu.memory_space<vmem>>, %arg2: memref<1x32x192xf32, #tpu.memory_space<vmem>>, %arg3: memref<2x1x96xf32, #tpu.memory_space<vmem>>, %arg4: memref<16x16xf32, #tpu.memory_space<vmem>>, %arg5: memref<32x256xf32, #tpu.memory_space<vmem>>, %arg6: memref<1x128xf32, #tpu.memory_space<vmem>>, %arg7: memref<16x128xf32, #tpu.memory_space<vmem>>, %arg8: memref<4x32xf32, #tpu.memory_space<vmem>>) attributes {dimension_semantics = [], scalar_prefetch = 0 : i64, scratch_operands = 0 : i64, tpu.core_type = #tpu.core_type<tc>} {
    %c0 = arith.constant 0 : index
    %c0_0 = arith.constant 0 : index
    %0 = vector.load %arg0[%c0, %c0_0] : memref<16x2xi32, #tpu.memory_space<vmem>>, vector<16x2xi32>
    %1 = tpu.iota {dimensions = array<i32: 1>} : vector<16x256xi32>
    %2 = vector.extract_strided_slice %0 {offsets = [0, 0], sizes = [16, 1], strides = [1, 1]} : vector<16x2xi32> to vector<16x1xi32>
    %3 = vector.broadcast %2 : vector<16x1xi32> to vector<16x256xi32>
    %4 = arith.cmpi eq, %1, %3 : vector<16x256xi32>
    %5 = vector.extract_strided_slice %0 {offsets = [0, 1], sizes = [16, 1], strides = [1, 1]} : vector<16x2xi32> to vector<16x1xi32>
    %6 = vector.broadcast %5 : vector<16x1xi32> to vector<16x256xi32>
    %7 = arith.cmpi eq, %1, %6 : vector<16x256xi32>
    %8 = arith.ori %4, %7 : vector<16x256xi1>
    %9 = arith.extui %8 : vector<16x256xi1> to vector<16x256xi32>
    %10 = arith.sitofp %9 : vector<16x256xi32> to vector<16x256xf32>
    %c0_1 = arith.constant 0 : index
    %c0_2 = arith.constant 0 : index
    %11 = vector.load %arg1[%c0_1, %c0_2] : memref<256x128xf32, #tpu.memory_space<vmem>>, vector<256x128xf32>
    %cst = arith.constant dense<0.000000e+00> : vector<16x128xf32>
    %12 = tpu.matmul %10, %11, %cst {dimension_numbers = #tpu.dot_dimension_numbers<[1], [0], [0], [1], [0, 0, 1, 1], [], []>} : vector<16x256xf32>, vector<256x128xf32>, vector<16x128xf32> -> vector<16x128xf32>
    %13 = vector.extract_strided_slice %12 {offsets = [0, 0], sizes = [16, 32], strides = [1, 1]} : vector<16x128xf32> to vector<16x32xf32>
    %14 = vector.extract_strided_slice %12 {offsets = [0, 32], sizes = [16, 96], strides = [1, 1]} : vector<16x128xf32> to vector<16x96xf32>
    %c0_3 = arith.constant 0 : index
    %c0_4 = arith.constant 0 : index
    %c0_5 = arith.constant 0 : index
    %15 = vector.load %arg3[%c0_3, %c0_4, %c0_5] : memref<2x1x96xf32, #tpu.memory_space<vmem>>, vector<1x1x96xf32>
    %16 = vector.shape_cast %15 : vector<1x1x96xf32> to vector<1x96xf32>
    %17 = vector.broadcast %16 : vector<1x96xf32> to vector<16x96xf32>
    %18 = arith.addf %14, %17 : vector<16x96xf32>
    %c0_6 = arith.constant 0 : index
    %c0_7 = arith.constant 0 : index
    %19 = vector.load %arg4[%c0_6, %c0_7] : memref<16x16xf32, #tpu.memory_space<vmem>>, vector<16x16xf32>
    %20 = vector.extract_strided_slice %18 {offsets = [0, 0], sizes = [16, 32], strides = [1, 1]} : vector<16x96xf32> to vector<16x32xf32>
    %21 = vector.extract_strided_slice %18 {offsets = [0, 32], sizes = [16, 64], strides = [1, 1]} : vector<16x96xf32> to vector<16x64xf32>
    %22 = arith.negf %21 : vector<16x64xf32>
    %23 = math.exp %22 : vector<16x64xf32>
    %cst_8 = arith.constant 1.000000e+00 : f32
    %24 = vector.broadcast %cst_8 : f32 to vector<16x64xf32>
    %25 = arith.addf %24, %23 : vector<16x64xf32>
    %26 = arith.divf %24, %25 : vector<16x64xf32>
    %27 = vector.extract_strided_slice %26 {offsets = [0, 0], sizes = [16, 32], strides = [1, 1]} : vector<16x64xf32> to vector<16x32xf32>
    %28 = vector.extract_strided_slice %26 {offsets = [0, 32], sizes = [16, 32], strides = [1, 1]} : vector<16x64xf32> to vector<16x32xf32>
    %cst_9 = arith.constant 0.000000e+00 : f32
    %29 = vector.broadcast %cst_9 : f32 to vector<2x32xf32>
    %30 = vector.extract_strided_slice %20 {offsets = [0, 0], sizes = [2, 32], strides = [1, 1]} : vector<16x32xf32> to vector<2x32xf32>
    %31 = vector.extract_strided_slice %27 {offsets = [0, 0], sizes = [2, 32], strides = [1, 1]} : vector<16x32xf32> to vector<2x32xf32>
    %32 = arith.subf %29, %30 : vector<2x32xf32>
    %33 = arith.mulf %32, %31 : vector<2x32xf32>
    %34 = arith.addf %33, %30 : vector<2x32xf32>
    %35 = vector.extract_strided_slice %20 {offsets = [2, 0], sizes = [2, 32], strides = [1, 1]} : vector<16x32xf32> to vector<2x32xf32>
    %36 = vector.extract_strided_slice %27 {offsets = [2, 0], sizes = [2, 32], strides = [1, 1]} : vector<16x32xf32> to vector<2x32xf32>
    %37 = arith.subf %34, %35 : vector<2x32xf32>
    %38 = arith.mulf %37, %36 : vector<2x32xf32>
    %39 = arith.addf %38, %35 : vector<2x32xf32>
    %40 = vector.extract_strided_slice %20 {offsets = [4, 0], sizes = [2, 32], strides = [1, 1]} : vector<16x32xf32> to vector<2x32xf32>
    %41 = vector.extract_strided_slice %27 {offsets = [4, 0], sizes = [2, 32], strides = [1, 1]} : vector<16x32xf32> to vector<2x32xf32>
    %42 = arith.subf %39, %40 : vector<2x32xf32>
    %43 = arith.mulf %42, %41 : vector<2x32xf32>
    %44 = arith.addf %43, %40 : vector<2x32xf32>
    %45 = vector.extract_strided_slice %20 {offsets = [6, 0], sizes = [2, 32], strides = [1, 1]} : vector<16x32xf32> to vector<2x32xf32>
    %46 = vector.extract_strided_slice %27 {offsets = [6, 0], sizes = [2, 32], strides = [1, 1]} : vector<16x32xf32> to vector<2x32xf32>
    %47 = arith.subf %44, %45 : vector<2x32xf32>
    %48 = arith.mulf %47, %46 : vector<2x32xf32>
    %49 = arith.addf %48, %45 : vector<2x32xf32>
    %50 = vector.extract_strided_slice %20 {offsets = [8, 0], sizes = [2, 32], strides = [1, 1]} : vector<16x32xf32> to vector<2x32xf32>
    %51 = vector.extract_strided_slice %27 {offsets = [8, 0], sizes = [2, 32], strides = [1, 1]} : vector<16x32xf32> to vector<2x32xf32>
    %52 = arith.subf %49, %50 : vector<2x32xf32>
    %53 = arith.mulf %52, %51 : vector<2x32xf32>
    %54 = arith.addf %53, %50 : vector<2x32xf32>
    %55 = vector.extract_strided_slice %20 {offsets = [10, 0], sizes = [2, 32], strides = [1, 1]} : vector<16x32xf32> to vector<2x32xf32>
    %56 = vector.extract_strided_slice %27 {offsets = [10, 0], sizes = [2, 32], strides = [1, 1]} : vector<16x32xf32> to vector<2x32xf32>
    %57 = arith.subf %54, %55 : vector<2x32xf32>
    %58 = arith.mulf %57, %56 : vector<2x32xf32>
    %59 = arith.addf %58, %55 : vector<2x32xf32>
    %60 = vector.extract_strided_slice %20 {offsets = [12, 0], sizes = [2, 32], strides = [1, 1]} : vector<16x32xf32> to vector<2x32xf32>
    %61 = vector.extract_strided_slice %27 {offsets = [12, 0], sizes = [2, 32], strides = [1, 1]} : vector<16x32xf32> to vector<2x32xf32>
    %62 = arith.subf %59, %60 : vector<2x32xf32>
    %63 = arith.mulf %62, %61 : vector<2x32xf32>
    %64 = arith.addf %63, %60 : vector<2x32xf32>
    %65 = vector.extract_strided_slice %20 {offsets = [14, 0], sizes = [2, 32], strides = [1, 1]} : vector<16x32xf32> to vector<2x32xf32>
    %66 = vector.extract_strided_slice %27 {offsets = [14, 0], sizes = [2, 32], strides = [1, 1]} : vector<16x32xf32> to vector<2x32xf32>
    %67 = arith.subf %64, %65 : vector<2x32xf32>
    %68 = arith.mulf %67, %66 : vector<2x32xf32>
    %69 = arith.addf %68, %65 : vector<2x32xf32>
    %70 = tpu.concatenate %34, %39, %44, %49, %54, %59, %64, %69 in 0 : vector<2x32xf32>, vector<2x32xf32>, vector<2x32xf32>, vector<2x32xf32>, vector<2x32xf32>, vector<2x32xf32>, vector<2x32xf32>, vector<2x32xf32> -> vector<16x32xf32>
    %71 = arith.subf %70, %13 : vector<16x32xf32>
    %72 = arith.mulf %71, %28 : vector<16x32xf32>
    %73 = arith.addf %72, %13 : vector<16x32xf32>
    %c0_10 = arith.constant 0 : index
    %c0_11 = arith.constant 0 : index
    %c0_12 = arith.constant 0 : index
    %74 = vector.load %arg2[%c0_10, %c0_11, %c0_12] : memref<1x32x192xf32, #tpu.memory_space<vmem>>, vector<1x32x192xf32>
    %75 = vector.shape_cast %74 : vector<1x32x192xf32> to vector<32x192xf32>
    %cst_13 = arith.constant dense<0.000000e+00> : vector<16x192xf32>
    %76 = tpu.matmul %73, %75, %cst_13 {dimension_numbers = #tpu.dot_dimension_numbers<[1], [0], [0], [1], [0, 0, 1, 1], [], []>} : vector<16x32xf32>, vector<32x192xf32>, vector<16x192xf32> -> vector<16x192xf32>
    %77 = vector.extract_strided_slice %76 {offsets = [0, 0], sizes = [16, 96], strides = [1, 1]} : vector<16x192xf32> to vector<16x96xf32>
    %78 = vector.extract_strided_slice %76 {offsets = [0, 96], sizes = [16, 96], strides = [1, 1]} : vector<16x192xf32> to vector<16x96xf32>
    %cst_14 = arith.constant dense<0.000000e+00> : vector<16x96xf32>
    %79 = tpu.matmul %19, %78, %cst_14 {dimension_numbers = #tpu.dot_dimension_numbers<[1], [0], [0], [1], [0, 0, 1, 1], [], []>} : vector<16x16xf32>, vector<16x96xf32>, vector<16x96xf32> -> vector<16x96xf32>
    %80 = arith.addf %77, %79 : vector<16x96xf32>
    %c1 = arith.constant 1 : index
    %c0_15 = arith.constant 0 : index
    %c0_16 = arith.constant 0 : index
    %81 = vector.load %arg3[%c1, %c0_15, %c0_16] : memref<2x1x96xf32, #tpu.memory_space<vmem>>, vector<1x1x96xf32>
    %82 = vector.shape_cast %81 : vector<1x1x96xf32> to vector<1x96xf32>
    %83 = vector.broadcast %82 : vector<1x96xf32> to vector<16x96xf32>
    %84 = arith.addf %80, %83 : vector<16x96xf32>
    %85 = vector.extract_strided_slice %84 {offsets = [0, 0], sizes = [16, 32], strides = [1, 1]} : vector<16x96xf32> to vector<16x32xf32>
    %86 = vector.extract_strided_slice %84 {offsets = [0, 32], sizes = [16, 64], strides = [1, 1]} : vector<16x96xf32> to vector<16x64xf32>
    %87 = arith.negf %86 : vector<16x64xf32>
    %88 = math.exp %87 : vector<16x64xf32>
    %cst_17 = arith.constant 1.000000e+00 : f32
    %89 = vector.broadcast %cst_17 : f32 to vector<16x64xf32>
    %90 = arith.addf %89, %88 : vector<16x64xf32>
    %91 = arith.divf %89, %90 : vector<16x64xf32>
    %92 = vector.extract_strided_slice %91 {offsets = [0, 0], sizes = [16, 32], strides = [1, 1]} : vector<16x64xf32> to vector<16x32xf32>
    %93 = vector.extract_strided_slice %91 {offsets = [0, 32], sizes = [16, 32], strides = [1, 1]} : vector<16x64xf32> to vector<16x32xf32>
    %cst_18 = arith.constant 0.000000e+00 : f32
    %94 = vector.broadcast %cst_18 : f32 to vector<2x32xf32>
    %95 = vector.extract_strided_slice %85 {offsets = [0, 0], sizes = [2, 32], strides = [1, 1]} : vector<16x32xf32> to vector<2x32xf32>
    %96 = vector.extract_strided_slice %92 {offsets = [0, 0], sizes = [2, 32], strides = [1, 1]} : vector<16x32xf32> to vector<2x32xf32>
    %97 = arith.subf %94, %95 : vector<2x32xf32>
    %98 = arith.mulf %97, %96 : vector<2x32xf32>
    %99 = arith.addf %98, %95 : vector<2x32xf32>
    %100 = vector.extract_strided_slice %85 {offsets = [2, 0], sizes = [2, 32], strides = [1, 1]} : vector<16x32xf32> to vector<2x32xf32>
    %101 = vector.extract_strided_slice %92 {offsets = [2, 0], sizes = [2, 32], strides = [1, 1]} : vector<16x32xf32> to vector<2x32xf32>
    %102 = arith.subf %99, %100 : vector<2x32xf32>
    %103 = arith.mulf %102, %101 : vector<2x32xf32>
    %104 = arith.addf %103, %100 : vector<2x32xf32>
    %105 = vector.extract_strided_slice %85 {offsets = [4, 0], sizes = [2, 32], strides = [1, 1]} : vector<16x32xf32> to vector<2x32xf32>
    %106 = vector.extract_strided_slice %92 {offsets = [4, 0], sizes = [2, 32], strides = [1, 1]} : vector<16x32xf32> to vector<2x32xf32>
    %107 = arith.subf %104, %105 : vector<2x32xf32>
    %108 = arith.mulf %107, %106 : vector<2x32xf32>
    %109 = arith.addf %108, %105 : vector<2x32xf32>
    %110 = vector.extract_strided_slice %85 {offsets = [6, 0], sizes = [2, 32], strides = [1, 1]} : vector<16x32xf32> to vector<2x32xf32>
    %111 = vector.extract_strided_slice %92 {offsets = [6, 0], sizes = [2, 32], strides = [1, 1]} : vector<16x32xf32> to vector<2x32xf32>
    %112 = arith.subf %109, %110 : vector<2x32xf32>
    %113 = arith.mulf %112, %111 : vector<2x32xf32>
    %114 = arith.addf %113, %110 : vector<2x32xf32>
    %115 = vector.extract_strided_slice %85 {offsets = [8, 0], sizes = [2, 32], strides = [1, 1]} : vector<16x32xf32> to vector<2x32xf32>
    %116 = vector.extract_strided_slice %92 {offsets = [8, 0], sizes = [2, 32], strides = [1, 1]} : vector<16x32xf32> to vector<2x32xf32>
    %117 = arith.subf %114, %115 : vector<2x32xf32>
    %118 = arith.mulf %117, %116 : vector<2x32xf32>
    %119 = arith.addf %118, %115 : vector<2x32xf32>
    %120 = vector.extract_strided_slice %85 {offsets = [10, 0], sizes = [2, 32], strides = [1, 1]} : vector<16x32xf32> to vector<2x32xf32>
    %121 = vector.extract_strided_slice %92 {offsets = [10, 0], sizes = [2, 32], strides = [1, 1]} : vector<16x32xf32> to vector<2x32xf32>
    %122 = arith.subf %119, %120 : vector<2x32xf32>
    %123 = arith.mulf %122, %121 : vector<2x32xf32>
    %124 = arith.addf %123, %120 : vector<2x32xf32>
    %125 = vector.extract_strided_slice %85 {offsets = [12, 0], sizes = [2, 32], strides = [1, 1]} : vector<16x32xf32> to vector<2x32xf32>
    %126 = vector.extract_strided_slice %92 {offsets = [12, 0], sizes = [2, 32], strides = [1, 1]} : vector<16x32xf32> to vector<2x32xf32>
    %127 = arith.subf %124, %125 : vector<2x32xf32>
    %128 = arith.mulf %127, %126 : vector<2x32xf32>
    %129 = arith.addf %128, %125 : vector<2x32xf32>
    %130 = vector.extract_strided_slice %85 {offsets = [14, 0], sizes = [2, 32], strides = [1, 1]} : vector<16x32xf32> to vector<2x32xf32>
    %131 = vector.extract_strided_slice %92 {offsets = [14, 0], sizes = [2, 32], strides = [1, 1]} : vector<16x32xf32> to vector<2x32xf32>
    %132 = arith.subf %129, %130 : vector<2x32xf32>
    %133 = arith.mulf %132, %131 : vector<2x32xf32>
    %134 = arith.addf %133, %130 : vector<2x32xf32>
    %135 = tpu.concatenate %99, %104, %109, %114, %119, %124, %129, %134 in 0 : vector<2x32xf32>, vector<2x32xf32>, vector<2x32xf32>, vector<2x32xf32>, vector<2x32xf32>, vector<2x32xf32>, vector<2x32xf32>, vector<2x32xf32> -> vector<16x32xf32>
    %136 = arith.subf %135, %73 : vector<16x32xf32>
    %137 = arith.mulf %136, %93 : vector<16x32xf32>
    %138 = arith.addf %137, %73 : vector<16x32xf32>
    %c0_19 = arith.constant 0 : index
    %c0_20 = arith.constant 0 : index
    %139 = vector.load %arg5[%c0_19, %c0_20] : memref<32x256xf32, #tpu.memory_space<vmem>>, vector<32x256xf32>
    %cst_21 = arith.constant dense<0.000000e+00> : vector<16x256xf32>
    %140 = tpu.matmul %138, %139, %cst_21 {dimension_numbers = #tpu.dot_dimension_numbers<[1], [0], [0], [1], [0, 0, 1, 1], [], []>} : vector<16x32xf32>, vector<32x256xf32>, vector<16x256xf32> -> vector<16x256xf32>
    %141 = vector.extract_strided_slice %140 {offsets = [0, 0], sizes = [16, 128], strides = [1, 1]} : vector<16x256xf32> to vector<16x128xf32>
    %142 = vector.extract_strided_slice %140 {offsets = [0, 128], sizes = [16, 128], strides = [1, 1]} : vector<16x256xf32> to vector<16x128xf32>
    %cst_22 = arith.constant dense<0.000000e+00> : vector<16x128xf32>
    %143 = tpu.matmul %19, %142, %cst_22 {dimension_numbers = #tpu.dot_dimension_numbers<[1], [0], [0], [1], [0, 0, 1, 1], [], []>} : vector<16x16xf32>, vector<16x128xf32>, vector<16x128xf32> -> vector<16x128xf32>
    %144 = arith.addf %141, %143 : vector<16x128xf32>
    %c0_23 = arith.constant 0 : index
    %c0_24 = arith.constant 0 : index
    %145 = vector.load %arg6[%c0_23, %c0_24] : memref<1x128xf32, #tpu.memory_space<vmem>>, vector<1x128xf32>
    %146 = vector.broadcast %145 : vector<1x128xf32> to vector<16x128xf32>
    %147 = arith.addf %144, %146 : vector<16x128xf32>
    %c0_25 = arith.constant 0 : index
    %c0_26 = arith.constant 0 : index
    %148 = vector.load %arg7[%c0_25, %c0_26] : memref<16x128xf32, #tpu.memory_space<vmem>>, vector<16x128xf32>
    tpu.vector_store %arg7[%c0_25, %c0_26], %147 {strides = array<i32>} : memref<16x128xf32, #tpu.memory_space<vmem>>, vector<16x128xf32>,
    %149 = tpu.concatenate %69, %134 in 0 : vector<2x32xf32>, vector<2x32xf32> -> vector<4x32xf32>
    %c0_27 = arith.constant 0 : index
    %c0_28 = arith.constant 0 : index
    %150 = vector.load %arg8[%c0_27, %c0_28] : memref<4x32xf32, #tpu.memory_space<vmem>>, vector<4x32xf32>
    tpu.vector_store %arg8[%c0_27, %c0_28], %149 {strides = array<i32>} : memref<4x32xf32, #tpu.memory_space<vmem>>, vector<4x32xf32>,
    return
  }
}

</mosaic_0001>

<bundles_post_ra>
// kernel: _birnn_lm_call.1
= control target key start
LH: loop header
LB: loop body
LE: loop exit
PB: predicated region body
PF: predicated region fallthrough
CT: control target
= control target key end

     0   :  { %14 = vsyncpa [#allocation3], 0  ;;  %s1495_s0 = inlined_call_operand.vmem [shape: s32[16,2], index: 0, kind: input, shape index: {}]   ;;  %s1496_s1 = inlined_call_operand.hbm [shape: f32[256,128], index: 1, kind: input, shape index: {}]   ;;  %s1497_s2 = inlined_call_operand.vmem [shape: f32[1,32,192], index: 2, kind: input, shape index: {}]   ;;  %s1498_s3 = inlined_call_operand.vmem [shape: f32[2,1,96], index: 3, kind: input, shape index: {}]   ;;  %s1499_s4 = inlined_call_operand.hbm [shape: f32[16,16], index: 4, kind: input, shape index: {}]   ;;  %s1500_s5 = inlined_call_operand.hbm [shape: f32[32,256], index: 5, kind: input, shape index: {}]   ;;  %s1501_s6 = inlined_call_operand.vmem [shape: f32[1,128], index: 6, kind: input, shape index: {}]   ;;  %s1502_s7 = inlined_call_operand.hbm [shape: f32[16,128], index: 7, kind: output, shape index: {0}]   ;;  %s1503_s8 = inlined_call_operand.hbm [shape: f32[4,32], index: 8, kind: output, shape index: {1}]  }
   0x1   :  { %15 = vsyncpa [#allocation6], 0 }
   0x2   :  { %16 = vsyncpa [#allocation4], 0 }
   0x3   :  { %17 = vsyncpa [#allocation10], 0  ;;  %s1209_s27 = smov [#allocation5]   ;;  %s1210_s29 = smov [#allocation2]  }
   0x4   :  { %s41_s28 = sshll.u32 %s1209_s27, 4  ;;  %s25_s30 = sshll.u32 %s1210_s29, 4  ;;  %s42_s28 = int_to_ptr.vmem [resolvable:$true] %s41_s28  ;;  %s1270_s30 = int_to_ptr.vmem [resolvable:$true] %s25_s30 }
   0x5   :  { %s1091_s11 = scalar_lea.hbm %s1499_s4, 256 }
   0x6   :  { %p1092_p0 = scmp.ne.s32.totalorder %s1499_s4, %s1091_s11  ;;  %p1095_p1 = scmp.lt.u32.totalorder %s1091_s11, %s1499_s4 }
   0x8   :  { %p1097_p2 = pnand %p1095_p1, %p1092_p0 }
   0xa   :  { %1100 = shalt.err (!%p1097_p2)
}
   0xb   :  { %s1101_s16 = scalar_lea.vmem %s42_s28, 256  ;;  %p1106_p4 = scmp.lt.s32.totalorder %s42_s28, %s42_s28 }
   0xc   :  { %p1102_p3 = scmp.ne.s32.totalorder %s42_s28, %s1101_s16  ;;  %p1107_p5 = scmp.lt.s32.totalorder %s1101_s16, %s1101_s16 }
   0xe   :  { %p1108_p6 = por %p1107_p5, %p1106_p4 }
  0x10   :  { %p1109_p7 = pnand %p1108_p6, %p1102_p3 }
  0x12   :  { %1112 = shalt.err (!%p1109_p7)
}
  0x13   :  { %s1211_s17 = smov 128   ;;  %s1212_s18 = smov 8  }
  0x14   :  { %47 = dma.hbm_to_vmem [thread:$0]  %s1499_s4, 256, %s42_s28, [#allocation6], %s1211_s17, %s1211_s17, %s1212_s18  }
  0x15   :  { %s1113_s23 = scalar_lea.hbm %s1496_s1, 4096 }
  0x16   :  { %p1114_p8 = scmp.ne.s32.totalorder %s1496_s1, %s1113_s23  ;;  %p1117_p9 = scmp.lt.u32.totalorder %s1113_s23, %s1496_s1 }
  0x18   :  { %p1119_p10 = pnand %p1117_p9, %p1114_p8 }
  0x1a   :  { %1122 = shalt.err (!%p1119_p10)
}
  0x1b   :  { %s1123_s29 = scalar_lea.vmem %s1270_s30, 4096  ;;  %p1128_p12 = scmp.lt.s32.totalorder %s1270_s30, %s1270_s30 }
  0x1c   :  { %p1124_p11 = scmp.ne.s32.totalorder %s1270_s30, %s1123_s29  ;;  %p1129_p13 = scmp.lt.s32.totalorder %s1123_s29, %s1123_s29 }
  0x1e   :  { %p1130_p0 = por %p1129_p13, %p1128_p12 }
  0x20   :  { %p1131_p1 = pnand %p1130_p0, %p1124_p11 }
  0x22   :  { %1134 = shalt.err (!%p1131_p1)
}
  0x23   :  { %31 = dma.hbm_to_vmem [thread:$0]  %s1496_s1, 4096, %s1270_s30, [#allocation3], %s1211_s17, %s1211_s17, %s1212_s18  }
  0x24   :  { %s1213_s9 = smov [#allocation7]   ;;  %s1135_s13 = scalar_lea.hbm %s1500_s5, 1024 }
  0x25   :  { %s53_s10 = sshll.u32 %s1213_s9, 4  ;;  %p1136_p2 = scmp.ne.s32.totalorder %s1500_s5, %s1135_s13  ;;  %s54_s10 = int_to_ptr.vmem [resolvable:$true] %s53_s10 }
  0x26   :  { %p1139_p3 = scmp.lt.u32.totalorder %s1135_s13, %s1500_s5 }
  0x28   :  { %p1141_p4 = pnand %p1139_p3, %p1136_p2 }
  0x2a   :  { %1144 = shalt.err (!%p1141_p4)
}
  0x2b   :  { %s1145_s20 = scalar_lea.vmem %s54_s10, 1024  ;;  %p1150_p6 = scmp.lt.s32.totalorder %s54_s10, %s54_s10 }
  0x2c   :  { %p1146_p5 = scmp.ne.s32.totalorder %s54_s10, %s1145_s20  ;;  %p1151_p7 = scmp.lt.s32.totalorder %s1145_s20, %s1145_s20 }
  0x2e   :  { %p1152_p8 = por %p1151_p7, %p1150_p6 }
  0x30   :  { %p1153_p9 = pnand %p1152_p8, %p1146_p5 }
  0x32   :  { %1156 = shalt.err (!%p1153_p9)
}
  0x33   :  { %s1214_s1 = smov 256   ;;  %s1215_s30 = smov 16  }
  0x34   :  { %59 = dma.hbm_to_vmem [thread:$0]  %s1500_s5, 1024, %s54_s10, [#allocation6], %s1214_s1, %s1214_s1, %s1215_s30  }
  0x35   :  { %1201 = dma.done.wait [#allocation3], 4096  }
  0x36   :  { %1202 = vsyncadd [#allocation3], 4294963200 }
  0x37   :  { %1203 = dma.done.wait [#allocation6], 1280  }
  0x38   :  { %1204 = vsyncadd [#allocation6], 4294966016  ;;  %v1216_v0 = vmov 0   ;;  %v71_v1 = vld [vmem:[%s1495_s0] sm:$0xff]  ;;  %v72_v2 = vld [vmem:[%s1495_s0 + $0x8] sm:$0xff]  ;;  %v1217_v14 = vmov 1   ;;  %v73_v53 = vlaneseq }
  0x39   :  { %1061 = vset.pattern.permute.xlu0 %v1216_v0  ;;  %1063 = vset.pattern.permute.xlu1 %v1216_v0  ;;  %v124_v3 = vld [vmem:[#allocation2 + $0x80] sm:$0xff]  ;;  %v125_v4 = vld [vmem:[#allocation2 + $0x88] sm:$0xff]  ;;  %v126_v8 = vld [vmem:[#allocation2 + $0x90] sm:$0xff]  ;;  %s1218_s27 = smov 32   ;;  %v1219_v60 = vmov 1.0   ;;  %s1220_s29 = smov 96  }
  0x3a   :  { %77 = vperm.xlu0 %1061, %v71_v1   ;;  %80 = vperm.xlu1 %1063, %v72_v2   ;;  %v108_v5 = vld [vmem:[#allocation2] sm:$0xff]  ;;  %v109_v6 = vld [vmem:[#allocation2 + $0x8] sm:$0xff]  ;;  %v989_v7 = vpack.c.bf16 %v125_v4, %v124_v3  ;;  %v127_v9 = vld [vmem:[#allocation2 + $0x98] sm:$0xff]  ;;  %v74_v54 = vand.u32 127, %v73_v53  ;;  %s1221_s4 = smov 64   ;;  %vm328_vm12 = vcmask 1041408  }
  0x3b   :  { %v991_v10 = vpack.c.bf16 %v109_v6, %v108_v5  ;;  %v993_v11 = vpack.c.bf16 %v127_v9, %v126_v8  ;;  %v110_v12 = vld [vmem:[#allocation2 + $0x10] sm:$0xff]  ;;  %v111_v13 = vld [vmem:[#allocation2 + $0x18] sm:$0xff]  ;;  %v128_v15 = vld [vmem:[#allocation2 + $0xa0] sm:$0xff]  ;;  %vm330_vm13 = vcmask 1043456   ;;  %vm332_vm14 = vcmask 1045504  }
  0x3c   :  { %990 = vmatprep.subr.bf16.mxu0 %v989_v7  ;;  %v129_v16 = vld [vmem:[#allocation2 + $0xa8] sm:$0xff]  ;;  %v995_v17 = vpack.c.bf16 %v111_v13, %v110_v12  ;;  %v112_v19 = vld [vmem:[#allocation2 + $0x20] sm:$0xff]  ;;  %v130_v21 = vld [vmem:[#allocation2 + $0xb0] sm:$0xff]  ;;  %v75_v57 = vadd.s32 128, %v74_v54  ;;  %vm371_vm15 = vcmask 261120  }
  0x3d   :  { %992 = vmatpush3.bf16.msra.mxu0 %v991_v10  ;;  %v997_v18 = vpack.c.bf16 %v129_v16, %v128_v15  ;;  %v113_v20 = vld [vmem:[#allocation2 + $0x28] sm:$0xff]  ;;  %v131_v22 = vld [vmem:[#allocation2 + $0xb8] sm:$0xff]  ;;  %v114_v25 = vld [vmem:[#allocation2 + $0x30] sm:$0xff] }
  0x3e   :  { %1062 = vset.pattern.permute.xlu0 %v1217_v14  ;;  %1064 = vset.pattern.permute.xlu1 %v1217_v14  ;;  %v999_v23 = vpack.c.bf16 %v113_v20, %v112_v19  ;;  %v1001_v24 = vpack.c.bf16 %v131_v22, %v130_v21  ;;  %v115_v26 = vld [vmem:[#allocation2 + $0x38] sm:$0xff]  ;;  %v132_v27 = vld [vmem:[#allocation2 + $0xc0] sm:$0xff]  ;;  %v133_v28 = vld [vmem:[#allocation2 + $0xc8] sm:$0xff] }
  0x3f   :  { %87 = vperm.xlu0 %1062, %v71_v1   ;;  %90 = vperm.xlu1 %1064, %v72_v2   ;;  %v913_v29 = vld [vmem:[%s1498_s3] ss:$0 sm:$0xff]  ;;  %v1003_v30 = vpack.c.bf16 %v115_v26, %v114_v25  ;;  %v1005_v31 = vpack.c.bf16 %v133_v28, %v132_v27  ;;  %v117_v33 = vld [vmem:[#allocation2 + $0x48] sm:$0xff]  ;;  %v134_v34 = vld [vmem:[#allocation2 + $0xd0] sm:$0xff]  ;;  %v1222_v27 = vmov 0.0  }
  0x40   :  { %994 = vmatprep.subr.bf16.mxu0 %v993_v11  ;;  %v116_v32 = vld [vmem:[#allocation2 + $0x40] sm:$0xff]  ;;  %v135_v35 = vld [vmem:[#allocation2 + $0xd8] sm:$0xff]  ;;  %v118_v38 = vld [vmem:[#allocation2 + $0x50] sm:$0xff]  ;;  %440 = vmatprep.mubr.f32.mxu1 %v1222_v27 }
  0x41   :  { %996 = vmatpush3.bf16.msra.mxu0 %v995_v17  ;;  %v1007_v36 = vpack.c.bf16 %v117_v33, %v116_v32  ;;  %v1009_v37 = vpack.c.bf16 %v135_v35, %v134_v34  ;;  %v119_v39 = vld [vmem:[#allocation2 + $0x58] sm:$0xff]  ;;  %v136_v40 = vld [vmem:[#allocation2 + $0xe0] sm:$0xff]  ;;  %v137_v41 = vld [vmem:[#allocation2 + $0xe8] sm:$0xff] }
  0x42   :  { %998 = vmatprep.subr.bf16.mxu0 %v997_v18  ;;  %v1011_v42 = vpack.c.bf16 %v119_v39, %v118_v38  ;;  %v1013_v43 = vpack.c.bf16 %v137_v41, %v136_v40  ;;  %v120_v44 = vld [vmem:[#allocation2 + $0x60] sm:$0xff]  ;;  %v121_v45 = vld [vmem:[#allocation2 + $0x68] sm:$0xff]  ;;  %v138_v46 = vld [vmem:[#allocation2 + $0xf0] sm:$0xff] }
  0x43   :  { %221 = vrot.lane.b32.xlu1 %v913_v29, %s1218_s27  ;;  %v139_v47 = vld [vmem:[#allocation2 + $0xf8] sm:$0xff]  ;;  %v1015_v48 = vpack.c.bf16 %v121_v45, %v120_v44  ;;  %v122_v50 = vld [vmem:[#allocation2 + $0x70] sm:$0xff]  ;;  %v358_v20 = vld [vmem:[%s1497_s2 + $0x8] sm:$0xff] }
  0x44   :  { %v1017_v49 = vpack.c.bf16 %v139_v47, %v138_v46  ;;  %v123_v51 = vld [vmem:[#allocation2 + $0x78] sm:$0xff]  ;;  %v357_v22 = vld [vmem:[%s1497_s2] sm:$0xff]  ;;  %v362_v25 = vld [vmem:[%s1497_s2 + $0x28] sm:$0xff] }
  0x45   :  { %1000 = vmatpush3.bf16.msra.mxu0 %v999_v23  ;;  %v1019_v52 = vpack.c.bf16 %v123_v51, %v122_v50  ;;  %v360_v21 = vld [vmem:[%s1497_s2 + $0x18] sm:$0xff] }
  0x46   :  { %1002 = vmatprep.subr.bf16.mxu0 %v1001_v24  ;;  %v1021_v23 = vpack.c.bf16 %v360_v21, %v358_v20  ;;  %v359_v24 = vld [vmem:[%s1497_s2 + $0x10] sm:$0xff]  ;;  %v364_v26 = vld [vmem:[%s1497_s2 + $0x38] sm:$0xff] }
  0x47   :  { %v1023_v28 = vpack.c.bf16 %v359_v24, %v357_v22  ;;  %v1025_v29 = vpack.c.bf16 %v364_v26, %v362_v25 }
  0x48   :  { %1022 = vmatprep.subr.bf16.mxu1 %v1021_v23 }
  0x49   :  { %1004 = vmatpush3.bf16.msra.mxu0 %v1003_v30  ;;  %v361_v30 = vld [vmem:[%s1497_s2 + $0x20] sm:$0xff]  ;;  %1024 = vmatpush1.bf16.msra.mxu1 %v1023_v28 }
  0x4a   :  { %1006 = vmatprep.subr.bf16.mxu0 %v1005_v31  ;;  %v363_v31 = vld [vmem:[%s1497_s2 + $0x30] sm:$0xff]  ;;  %1026 = vmatprep.subr.bf16.mxu1 %v1025_v29 }
  0x4b   :  { %v1027_v32 = vpack.c.bf16 %v363_v31, %v361_v30 }
  0x4d   :  { %1008 = vmatpush3.bf16.msra.mxu0 %v1007_v36  ;;  %1028 = vmatpush1.bf16.msra.mxu1 %v1027_v32 }
  0x4e   :  { %1010 = vmatprep.subr.bf16.mxu0 %v1009_v37 }
  0x51   :  { %1012 = vmatpush3.bf16.msra.mxu0 %v1011_v42 }
  0x52   :  { %1014 = vmatprep.subr.bf16.mxu0 %v1013_v43 }
  0x55   :  { %1016 = vmatpush3.bf16.msra.mxu0 %v1015_v48 }
  0x56   :  { %1018 = vmatprep.subr.bf16.mxu0 %v1017_v49 }
  0x59   :  { %1020 = vmatpush3.bf16.msra.mxu0 %v1019_v52 }
  0xb9   :  { %v78_v55 = vpop.permute.xlu0 %77  ;;  %v81_v56 = vpop.permute.xlu1 %80 }
  0xba   :  { %vm82_vm0 = vcmp.eq.s32.totalorder %v74_v54, %v78_v55  ;;  %vm85_vm3 = vcmp.eq.s32.totalorder %v75_v57, %v81_v56  ;;  %vm83_vm5 = vcmp.eq.s32.totalorder %v75_v57, %v78_v55  ;;  %vm84_vm7 = vcmp.eq.s32.totalorder %v74_v54, %v81_v56 }
  0xbe   :  { %v88_v58 = vpop.permute.xlu0 %87  ;;  %v91_v59 = vpop.permute.xlu1 %90 }
  0xbf   :  { %vm92_vm1 = vcmp.eq.s32.totalorder %v74_v54, %v88_v58  ;;  %vm93_vm2 = vcmp.eq.s32.totalorder %v75_v57, %v88_v58  ;;  %vm95_vm6 = vcmp.eq.s32.totalorder %v75_v57, %v91_v59  ;;  %vm94_vm9 = vcmp.eq.s32.totalorder %v74_v54, %v91_v59 }
  0xc0   :  { %vm96_vm4 = vmor %vm82_vm0, %vm92_vm1  ;;  %vm469_vm0 = vcmask 130048   ;;  %vm871_vm1 = vcmask 257024  }
  0xc1   :  { %vm97_vm8 = vmor %vm83_vm5, %vm93_vm2 }
  0xc2   :  { %909 = vmatprep.mubr.msk.f32.mxu0 %vm97_vm8, %v1219_v60  ;;  %vm99_vm10 = vmor %vm85_vm3, %vm95_vm6  ;;  %v222_v63 = vpop.permute.xlu1 %221 }
  0xc3   :  { %910 = vmatmul.mubr.msk.f32.vlgmr.msra.gmra.mrb[0].mxu0 %vm96_vm4, %v1219_v60  ;;  %vm98_vm11 = vmor %vm84_vm7, %vm94_vm9 }
  0xc4   :  { %911 = vmatprep.mubr.msk.f32.mxu0 %vm99_vm10, %v1219_v60 }
  0xc7   :  { %912 = vmatmul.mubr.msk.f32.gmra.mrb[2].mxu0 %vm98_vm11, %v1219_v60 }
 0x196   :  { %v961_v61 = vpop.f32.mrb[0].mxu0 }
 0x197   :  { %v962_v62 = vpop.f32.mrb[1].mxu0 }
 0x198   :  { %v963_v0 = vadd.f32 %v962_v62, %v961_v61 }
 0x19a   :  { %v1329_v1 = vadd.f32 %v963_v0, %v222_v63  ;;  %v964_v2 = vpop.f32.mrb[2].mxu0 }
 0x19b   :  { %v965_v3 = vpop.f32.mrb[3].mxu0 }
 0x19c   :  { %v914_v4 = vmul.f32 -1.442695, %v1329_v1  ;;  %v966_v5 = vadd.f32 %v965_v3, %v964_v2  ;;  %v240_v33 = vsub.f32 0.0, %v1329_v1  ;;  %v248_v37 = vrot.slane %v1329_v1, 2 }
 0x19d   :  { %v257_v43 = vrot.slane %v1329_v1, 4  ;;  %v266_v49 = vrot.slane %v1329_v1, 6 }
 0x19e   :  { %1075 = vpow2.f32 %v914_v4  ;;  %v1332_v6 = vadd.f32 %v966_v5, %v222_v63 }
 0x1a0   :  { %v915_v7 = vmul.f32 -1.442695, %v1332_v6  ;;  %v283_v3 = vrot.slane %v1332_v6, 2 }
 0x1a2   :  { %1077 = vpow2.f32 %v915_v7 }
 0x1a8   :  { %v1076_v8 = vpop.eup %1075 }
 0x1a9   :  { %v234_v9 = vadd.f32 1.0, %v1076_v8 }
 0x1ab   :  { %1079 = vrcp.f32 %v234_v9 }
 0x1ac   :  { %v1078_v10 = vpop.eup %1077 }
 0x1ad   :  { %v235_v11 = vadd.f32 1.0, %v1078_v10 }
 0x1af   :  { %1081 = vrcp.f32 %v235_v11  ;;  %v292_v11 = vrot.slane %v1332_v6, 4 }
 0x1b5   :  { %v1080_v12 = vpop.eup %1079 }
 0x1b6   :  { %242 = vrot.lane.b32.xlu0 %v1080_v12, %s1220_s29  ;;  %v251_v13 = vrot.slane %v1080_v12, 2  ;;  %v260_v14 = vrot.slane %v1080_v12, 4  ;;  %v269_v15 = vrot.slane %v1080_v12, 6 }
 0x1b8   :  { %252 = vrot.lane.b32.xlu1 %v251_v13, %s1220_s29 }
 0x1b9   :  { %v1082_v16 = vpop.eup %1081 }
 0x1ba   :  { %261 = vrot.lane.b32.xlu0 %v260_v14, %s1220_s29  ;;  %v286_v17 = vrot.slane %v1082_v16, 2  ;;  %v295_v18 = vrot.slane %v1082_v16, 4  ;;  %v304_v19 = vrot.slane %v1082_v16, 6 }
 0x1bc   :  { %270 = vrot.lane.b32.xlu1 %v269_v15, %s1220_s29  ;;  %v301_v15 = vrot.slane %v1332_v6, 6 }
 0x1be   :  { %277 = vrot.lane.b32.xlu0 %v1082_v16, %s1220_s29 }
 0x1c0   :  { %287 = vrot.lane.b32.xlu1 %v286_v17, %s1220_s29 }
 0x1c2   :  { %296 = vrot.lane.b32.xlu0 %v295_v18, %s1220_s29 }
 0x1c4   :  { %305 = vrot.lane.b32.xlu1 %v304_v19, %s1220_s29 }
 0x1c6   :  { %339 = vrot.lane.b32.xlu0 %v963_v0, %s1218_s27 }
 0x1c8   :  { %347 = vrot.lane.b32.xlu1 %v1080_v12, %s1221_s4 }
 0x1ca   :  { %341 = vrot.lane.b32.xlu0 %v966_v5, %s1218_s27 }
 0x1cc   :  { %349 = vrot.lane.b32.xlu1 %v1082_v16, %s1221_s4 }
 0x228   :  { %v243_v34 = vpop.permute.xlu0 %242 }
 0x229   :  { %v245_v35 = vmul.f32 %v243_v34, %v240_v33 }
 0x22a   :  { %v253_v38 = vpop.permute.xlu1 %252 }
 0x22b   :  { %v246_v36 = vadd.f32 %v245_v35, %v1329_v1  ;;  %v1403_v35 = vld [vmem:[#allocation5] sm:$0xff] }
 0x22c   :  { %v262_v41 = vpop.permute.xlu0 %261 }
 0x22d   :  { %v250_v39 = vsub.f32 %v246_v36, %v248_v37 }
 0x22e   :  { %v271_v44 = vpop.permute.xlu1 %270 }
 0x22f   :  { %v255_v40 = vmul.f32 %v253_v38, %v250_v39 }
 0x230   :  { %v278_v47 = vpop.permute.xlu0 %277 }
 0x231   :  { %v256_v42 = vadd.f32 %v255_v40, %v248_v37 }
 0x232   :  { %v288_v50 = vpop.permute.xlu1 %287 }
 0x233   :  { %v259_v45 = vsub.f32 %v256_v42, %v257_v43  ;;  %v311_v52 = vrot.slane %v256_v42, 6 }
 0x234   :  { %v297_v54 = vpop.permute.xlu0 %296 }
 0x235   :  { %v264_v46 = vmul.f32 %v262_v41, %v259_v45  ;;  %v329_v60 = vsel %vm328_vm12, %v246_v36, %v311_v52 }
 0x236   :  { %v306_v57 = vpop.permute.xlu1 %305 }
 0x237   :  { %v265_v48 = vadd.f32 %v264_v46, %v257_v43 }
 0x238   :  { %v340_v63 = vpop.permute.xlu0 %339 }
 0x239   :  { %v268_v51 = vsub.f32 %v265_v48, %v266_v49  ;;  %v314_v55 = vrot.slane %v265_v48, 4  ;;  %v1410_v48 = vld [vmem:[#allocation5 + $0x8] sm:$0xff] }
 0x23a   :  { %v348_v4 = vpop.permute.xlu1 %347 }
 0x23b   :  { %v273_v53 = vmul.f32 %v271_v44, %v268_v51  ;;  %v331_v61 = vsel %vm330_vm13, %v329_v60, %v314_v55 }
 0x23c   :  { %v342_v24 = vpop.permute.xlu0 %341 }
 0x23d   :  { %v274_v56 = vadd.f32 %v273_v53, %v266_v49 }
 0x23e   :  { %v350_v28 = vpop.permute.xlu1 %349 }
 0x23f   :  { %v317_v58 = vrot.slane %v274_v56, 2  ;;  %v275_v59 = vsub.f32 %v274_v56, %v1332_v6 }
 0x241   :  { %v280_v62 = vmul.f32 %v278_v47, %v275_v59  ;;  %v333_v0 = vsel %vm332_vm14, %v331_v61, %v317_v58 }
 0x242   :  { %v345_v1 = vsub.f32 %v333_v0, %v340_v63 }
 0x243   :  { %v281_v2 = vadd.f32 %v280_v62, %v1332_v6 }
 0x244   :  { %v353_v5 = vmul.f32 %v348_v4, %v345_v1  ;;  %v684_v4 = vld [vmem:[#allocation7 + $0x8] sm:$0xff] }
 0x245   :  { %v285_v7 = vsub.f32 %v281_v2, %v283_v3 }
 0x246   :  { %v355_v8 = vadd.f32 %v353_v5, %v340_v63  ;;  %v686_v5 = vld [vmem:[#allocation7 + $0x18] sm:$0xff] }
 0x247   :  { %v290_v9 = vmul.f32 %v288_v50, %v285_v7  ;;  %v921_v50 = vld [vmem:[%s1498_s3 + $0x1] ss:$0 sm:$0xff]  ;;  %v1033_v7 = vpack.c.bf16 %v686_v5, %v684_v4  ;;  %s1223_s3 = smov [#allocation9]  }
 0x248   :  { %367 = vrot.lane.b32.xlu0 %v355_v8, %s1220_s29  ;;  %v683_v8 = vld [vmem:[#allocation7] sm:$0xff]  ;;  %s891_s25 = sshll.u32 %s1223_s3, 4  ;;  %s892_s25 = int_to_ptr.vmem [resolvable:$true] %s891_s25 }
 0x249   :  { %v291_v10 = vadd.f32 %v290_v9, %v283_v3  ;;  %v685_v9 = vld [vmem:[#allocation7 + $0x10] sm:$0xff]  ;;  %s1157_s26 = scalar_lea.vmem %s892_s25, 64  ;;  %p1162_p11 = scmp.lt.s32.totalorder %s892_s25, %s892_s25 }
 0x24a   :  { %p1158_p10 = scmp.ne.s32.totalorder %s892_s25, %s1157_s26  ;;  %p1163_p12 = scmp.lt.s32.totalorder %s1157_s26, %s1157_s26 }
 0x24b   :  { %v294_v12 = vsub.f32 %v291_v10, %v292_v11  ;;  %v320_v17 = vrot.slane %v291_v10, 6 }
 0x24c   :  { %p1164_p13 = por %p1163_p12, %p1162_p11 }
 0x24d   :  { %v299_v13 = vmul.f32 %v297_v54, %v294_v12  ;;  %v334_v22 = vsel %vm328_vm12, %v281_v2, %v320_v17  ;;  %v689_v17 = vld [vmem:[#allocation7 + $0x30] sm:$0xff] }
 0x24e   :  { %p1165_p0 = pnand %p1164_p13, %p1158_p10 }
 0x24f   :  { %v300_v14 = vadd.f32 %v299_v13, %v292_v11  ;;  %v1035_v11 = vpack.c.bf16 %v685_v9, %v683_v8  ;;  %v688_v13 = vld [vmem:[#allocation7 + $0x28] sm:$0xff] }
 0x251   :  { %v303_v16 = vsub.f32 %v300_v14, %v301_v15  ;;  %v323_v19 = vrot.slane %v300_v14, 4  ;;  %v690_v14 = vld [vmem:[#allocation7 + $0x38] sm:$0xff] }
 0x253   :  { %v308_v18 = vmul.f32 %v306_v57, %v303_v16  ;;  %v335_v23 = vsel %vm330_vm13, %v334_v22, %v323_v19  ;;  %v687_v16 = vld [vmem:[#allocation7 + $0x20] sm:$0xff] }
 0x255   :  { %v1386_v20 = vadd.f32 %v308_v18, %v301_v15  ;;  %v1037_v15 = vpack.c.bf16 %v690_v14, %v688_v13  ;;  %v1039_v18 = vpack.c.bf16 %v689_v17, %v687_v16 }
 0x257   :  { %v326_v21 = vrot.slane %v1386_v20, 2 }
 0x259   :  { %v336_v25 = vsel %vm332_vm14, %v335_v23, %v326_v21 }
 0x25a   :  { %v346_v26 = vsub.f32 %v336_v25, %v342_v24 }
 0x25c   :  { %v354_v29 = vmul.f32 %v350_v28, %v346_v26 }
 0x25e   :  { %v356_v30 = vadd.f32 %v354_v29, %v342_v24 }
 0x260   :  { %369 = vrot.lane.b32.xlu1 %v356_v30, %s1220_s29 }
 0x2ba   :  { %v1393_v6 = vpop.permute.xlu0 %367 }
 0x2bb   :  { %916 = vmatmul.mubr.msk.f32.vlgmr.msra.gmra.mrb[0].mxu1 %vm371_vm15, %v1393_v6 }
 0x2bc   :  { %446 = vmatprep.mubr.f32.mxu1 %v1222_v27 }
 0x2d2   :  { %v1398_v31 = vpop.permute.xlu1 %369 }
 0x2d3   :  { %917 = vmatmul.mubr.msk.f32.gmra.mrb[2].mxu1 %vm371_vm15, %v1398_v31 }
 0x2d4   :  { %979 = vmatprep.mubr.msk.f32.mxu1 %vm469_vm0, %v1403_v35 }
 0x38e   :  { %v442_v32 = vpop.f32.mrb[0].mxu1 }
 0x38f   :  { %v444_v33 = vpop.f32.mrb[1].mxu1 }
 0x390   :  { %v1065_v34 = vpack.i.bf16 %v444_v33, %v442_v32 }
 0x392   :  { %1066 = vrot.lane.b32.xlu0 %v1065_v34, %s1218_s27 }
 0x3a6   :  { %v448_v36 = vpop.f32.mrb[2].mxu1 }
 0x3a7   :  { %v450_v37 = vpop.f32.mrb[3].mxu1 }
 0x3a8   :  { %v1070_v38 = vpack.i.bf16 %v450_v37, %v448_v36 }
 0x3aa   :  { %1071 = vrot.lane.b32.xlu1 %v1070_v38, %s1218_s27 }
 0x404   :  { %v1067_v39 = vpop.permute.xlu0 %1066 }
 0x405   :  { %v1069_v40 = vunpack.i.h.bf16 %v1067_v39  ;;  %v1068_v41 = vunpack.i.l.bf16 %v1067_v39 }
 0x407   :  { %v465_v45 = vsel %vm371_vm15, %v1068_v41, %v1069_v40 }
 0x41c   :  { %v1072_v42 = vpop.permute.xlu1 %1071 }
 0x41d   :  { %v1074_v43 = vunpack.i.h.bf16 %v1072_v42  ;;  %v1073_v44 = vunpack.i.l.bf16 %v1072_v42 }
 0x41f   :  { %v466_v46 = vsel %vm371_vm15, %v1073_v44, %v1074_v43 }
 0x420   :  { %v1029_v47 = vpack.c.bf16 %v466_v46, %v465_v45 }
 0x422   :  { %1030 = vmatprep.subr.bf16.mxu1 %v1029_v47 }
 0x423   :  { %1032 = vmatpush3.bf16.msra.mxu1 %v1029_v47 }
 0x424   :  { %1034 = vmatprep.subr.bf16.mxu1 %v1033_v7 }
 0x426   :  { %980 = vmatmul.mubr.msk.f32.vlgmr.msra.gmra.mrb[4].mxu1 %vm469_vm0, %v1410_v48 }
 0x427   :  { %761 = vmatprep.mubr.f32.mxu1 %v1222_v27  ;;  %1036 = vmatpush1.bf16.msra.mxu1 %v1035_v11 }
 0x428   :  { %1038 = vmatprep.subr.bf16.mxu1 %v1037_v15 }
 0x42b   :  { %1040 = vmatpush1.bf16.msra.mxu1 %v1039_v18 }
 0x4f9   :  { %v981_v49 = vpop.f32.mrb[4].mxu1 }
 0x4fa   :  { %v552_v51 = vadd.f32 %v981_v49, %v448_v36  ;;  %v542_v52 = vpop.f32.mrb[5].mxu1 }
 0x4fb   :  { %v551_v53 = vadd.f32 %v542_v52, %v442_v32 }
 0x4fc   :  { %v1418_v54 = vadd.f32 %v921_v50, %v552_v51 }
 0x4fd   :  { %v1420_v55 = vadd.f32 %v921_v50, %v551_v53 }
 0x4fe   :  { %v923_v56 = vmul.f32 -1.442695, %v1418_v54  ;;  %v636_v4 = vrot.slane %v1418_v54, 6 }
 0x4ff   :  { %v922_v57 = vmul.f32 -1.442695, %v1420_v55  ;;  %v575_v19 = vsub.f32 0.0, %v1420_v55  ;;  %v583_v24 = vrot.slane %v1420_v55, 2  ;;  %v592_v30 = vrot.slane %v1420_v55, 4 }
 0x500   :  { %v601_v37 = vrot.slane %v1420_v55, 6 }
 0x501   :  { %1083 = vpow2.f32 %v922_v57 }
 0x502   :  { %1085 = vpow2.f32 %v923_v56  ;;  %v618_v56 = vrot.slane %v1418_v54, 2 }
 0x50b   :  { %v1084_v58 = vpop.eup %1083 }
 0x50c   :  { %v569_v59 = vadd.f32 1.0, %v1084_v58  ;;  %v1086_v60 = vpop.eup %1085 }
 0x50d   :  { %v570_v61 = vadd.f32 1.0, %v1086_v60 }
 0x50e   :  { %1087 = vrcp.f32 %v569_v59 }
 0x50f   :  { %1089 = vrcp.f32 %v570_v61 }
 0x518   :  { %v1088_v62 = vpop.eup %1087 }
 0x519   :  { %577 = vrot.lane.b32.xlu0 %v1088_v62, %s1220_s29  ;;  %v586_v63 = vrot.slane %v1088_v62, 2  ;;  %v595_v0 = vrot.slane %v1088_v62, 4  ;;  %v604_v1 = vrot.slane %v1088_v62, 6  ;;  %v1090_v2 = vpop.eup %1089 }
 0x51a   :  { %v621_v3 = vrot.slane %v1090_v2, 2  ;;  %v630_v10 = vrot.slane %v1090_v2, 4  ;;  %v639_v12 = vrot.slane %v1090_v2, 6 }
 0x51b   :  { %587 = vrot.lane.b32.xlu1 %v586_v63, %s1220_s29 }
 0x51d   :  { %596 = vrot.lane.b32.xlu0 %v595_v0, %s1220_s29  ;;  %v627_v0 = vrot.slane %v1418_v54, 4 }
 0x51f   :  { %605 = vrot.lane.b32.xlu1 %v604_v1, %s1220_s29 }
 0x521   :  { %612 = vrot.lane.b32.xlu0 %v1090_v2, %s1220_s29 }
 0x523   :  { %622 = vrot.lane.b32.xlu1 %v621_v3, %s1220_s29 }
 0x525   :  { %631 = vrot.lane.b32.xlu0 %v630_v10, %s1220_s29 }
 0x527   :  { %640 = vrot.lane.b32.xlu1 %v639_v12, %s1220_s29 }
 0x529   :  { %673 = vrot.lane.b32.xlu0 %v1088_v62, %s1221_s4 }
 0x52b   :  { %675 = vrot.lane.b32.xlu1 %v1090_v2, %s1221_s4 }
 0x58b   :  { %v578_v21 = vpop.permute.xlu0 %577 }
 0x58c   :  { %v580_v22 = vmul.f32 %v578_v21, %v575_v19 }
 0x58d   :  { %v588_v26 = vpop.permute.xlu1 %587 }
 0x58e   :  { %v581_v23 = vadd.f32 %v580_v22, %v1420_v55 }
 0x58f   :  { %v597_v32 = vpop.permute.xlu0 %596 }
 0x590   :  { %v585_v25 = vsub.f32 %v581_v23, %v583_v24 }
 0x591   :  { %v606_v40 = vpop.permute.xlu1 %605 }
 0x592   :  { %v590_v28 = vmul.f32 %v588_v26, %v585_v25 }
 0x593   :  { %v613_v38 = vpop.permute.xlu0 %612 }
 0x594   :  { %v591_v29 = vadd.f32 %v590_v28, %v583_v24 }
 0x595   :  { %v623_v60 = vpop.permute.xlu1 %622 }
 0x596   :  { %v594_v33 = vsub.f32 %v591_v29, %v592_v30  ;;  %v646_v41 = vrot.slane %v591_v29, 6 }
 0x597   :  { %v632_v45 = vpop.permute.xlu0 %631 }
 0x598   :  { %v599_v34 = vmul.f32 %v597_v32, %v594_v33  ;;  %v663_v49 = vsel %vm328_vm12, %v581_v23, %v646_v41 }
 0x599   :  { %v641_v7 = vpop.permute.xlu1 %640 }
 0x59a   :  { %v600_v36 = vadd.f32 %v599_v34, %v592_v30 }
 0x59b   :  { %v674_v57 = vpop.permute.xlu0 %673 }
 0x59c   :  { %v603_v39 = vsub.f32 %v600_v36, %v601_v37  ;;  %v649_v43 = vrot.slane %v600_v36, 4 }
 0x59d   :  { %v676_v16 = vpop.permute.xlu1 %675 }
 0x59e   :  { %v608_v42 = vmul.f32 %v606_v40, %v603_v39  ;;  %v664_v50 = vsel %vm330_vm13, %v663_v49, %v649_v43 }
 0x5a0   :  { %v609_v44 = vadd.f32 %v608_v42, %v601_v37 }
 0x5a2   :  { %v652_v46 = vrot.slane %v609_v44, 2  ;;  %v610_v47 = vsub.f32 %v609_v44, %v1418_v54 }
 0x5a4   :  { %v615_v51 = vmul.f32 %v613_v38, %v610_v47  ;;  %v665_v52 = vsel %vm332_vm14, %v664_v50, %v652_v46 }
 0x5a5   :  { %v671_v53 = vsub.f32 %v665_v52, %v1393_v6 }
 0x5a6   :  { %v616_v55 = vadd.f32 %v615_v51, %v1418_v54 }
 0x5a7   :  { %v679_v58 = vmul.f32 %v674_v57, %v671_v53 }
 0x5a8   :  { %v620_v59 = vsub.f32 %v616_v55, %v618_v56 }
 0x5a9   :  { %v681_v61 = vadd.f32 %v679_v58, %v1393_v6 }
 0x5aa   :  { %v625_v62 = vmul.f32 %v623_v60, %v620_v59 }
 0x5ab   :  { %924 = vmatmul.mubr.msk.f32.vlgmr.msra.gmra.mrb[6].mxu1 %vm371_vm15, %v681_v61 }
 0x5ac   :  { %v626_v63 = vadd.f32 %v625_v62, %v618_v56  ;;  %767 = vmatprep.mubr.f32.mxu1 %v1222_v27 }
 0x5ae   :  { %v629_v1 = vsub.f32 %v626_v63, %v627_v0  ;;  %v655_v8 = vrot.slane %v626_v63, 6 }
 0x5b0   :  { %v634_v2 = vmul.f32 %v632_v45, %v629_v1  ;;  %v666_v12 = vsel %vm328_vm12, %v616_v55, %v655_v8 }
 0x5b2   :  { %v635_v3 = vadd.f32 %v634_v2, %v627_v0 }
 0x5b4   :  { %v638_v5 = vsub.f32 %v635_v3, %v636_v4  ;;  %v658_v10 = vrot.slane %v635_v3, 4 }
 0x5b6   :  { %v643_v9 = vmul.f32 %v641_v7, %v638_v5  ;;  %v667_v14 = vsel %vm330_vm13, %v666_v12, %v658_v10 }
 0x5b8   :  { %v644_v11 = vadd.f32 %v643_v9, %v636_v4 }
 0x5ba   :  { %v661_v6 = vrot.slane %v644_v11, 2  ;;  %v862_v13 = vrot.slane %v644_v11, 6 }
 0x5bc   :  { %v668_v15 = vsel %vm332_vm14, %v667_v14, %v661_v6  ;;  %863 = vrot.lane.b32.xlu0 %v862_v13, %s1218_s27 }
 0x5bd   :  { %v672_v27 = vsub.f32 %v668_v15, %v1398_v31 }
 0x5bf   :  { %v680_v54 = vmul.f32 %v676_v16, %v672_v27 }
 0x5c1   :  { %v682_v17 = vadd.f32 %v680_v54, %v1398_v31 }
 0x5c3   :  { %925 = vmatmul.mubr.msk.f32.gmra.mrb[8].mxu1 %vm371_vm15, %v682_v17 }
 0x5c4   :  { %986 = vmatprep.mubr.msk.f32.mxu1 %vm469_vm0, %v1403_v35 }
 0x62e   :  { %v864_v18 = vpop.permute.xlu0 %863 }
 0x62f   :  { %v866_v19 = vsel %vm328_vm12, %v1386_v20, %v864_v18 }
 0x630   :  { %868 = vrot.lane.b32.xlu1 %v866_v19, %s1220_s29 }
 0x67e   :  { %v763_v21 = vpop.f32.mrb[6].mxu1 }
 0x67f   :  { %v765_v22 = vpop.f32.mrb[7].mxu1 }
 0x696   :  { %v769_v23 = vpop.f32.mrb[8].mxu1 }
 0x697   :  { %v771_v24 = vpop.f32.mrb[9].mxu1 }
 0x698   :  { %v1041_v25 = vpack.c.bf16 %v771_v24, %v765_v22 }
 0x69a   :  { %1042 = vmatprep.subr.bf16.mxu1 %v1041_v25 }
 0x69b   :  { %1044 = vmatpush3.bf16.msra.mxu1 %v1041_v25 }
 0x69e   :  { %987 = vmatmul.mubr.msk.f32.vlgmr.msra.gmra.mrb[10].mxu1 %vm469_vm0, %v1410_v48 }
 0x6a2   :  { %v869_v31 = vpop.permute.xlu1 %868 }
 0x6a3   :  { %872 = vst.msk [vmem:[#allocation9] sm:$0xf] %vm871_vm1, %v869_v31 }
 0x6a4   :  { %1168 = shalt.err (!%p1165_p0)
}
 0x6a5   :  { %s1169_s27 = scalar_lea.hbm %s1503_s8, 64 }
 0x6a6   :  { %p1170_p1 = scmp.ne.s32.totalorder %s1503_s8, %s1169_s27  ;;  %p1173_p2 = scmp.lt.u32.totalorder %s1169_s27, %s1503_s8 }
 0x6a8   :  { %p1175_p3 = pnand %p1173_p2, %p1170_p1 }
 0x6aa   :  { %1178 = shalt.err (!%p1175_p3)
}
 0x6ab   :  { %894 = dma.vmem_to_hbm [thread:$0]  %s892_s25, 64, %s1503_s8, [#allocation10]   ;;  %v928_v35 = vld [vmem:[%s1501_s6] ss:$0 sm:$0xff] }
 0x6ac   :  { %s1224_s14 = smov [#allocation8]  }
 0x6ad   :  { %s878_s15 = sshll.u32 %s1224_s14, 4  ;;  %s879_s15 = int_to_ptr.vmem [resolvable:$true] %s878_s15 }
 0x6ae   :  { %s1179_s16 = scalar_lea.vmem %s879_s15, 256  ;;  %p1184_p5 = scmp.lt.s32.totalorder %s879_s15, %s879_s15 }
 0x6af   :  { %p1180_p4 = scmp.ne.s32.totalorder %s879_s15, %s1179_s16  ;;  %p1185_p6 = scmp.lt.s32.totalorder %s1179_s16, %s1179_s16 }
 0x6b1   :  { %p1186_p7 = por %p1185_p6, %p1184_p5 }
 0x6b3   :  { %p1187_p8 = pnand %p1186_p7, %p1180_p4 }
 0x771   :  { %v988_v20 = vpop.f32.mrb[10].mxu1 }
 0x772   :  { %v850_v48 = vadd.f32 %v988_v20, %v769_v23  ;;  %v840_v26 = vpop.f32.mrb[11].mxu1 }
 0x773   :  { %v849_v28 = vadd.f32 %v840_v26, %v763_v21 }
 0x774   :  { %v859_v29 = vadd.f32 %v928_v35, %v850_v48 }
 0x775   :  { %v858_v30 = vadd.f32 %v928_v35, %v849_v28 }
 0x776   :  { %861 = vst [vmem:[#allocation8 + $0x8] sm:$0xff] %v859_v29 }
 0x777   :  { %860 = vst [vmem:[#allocation8] sm:$0xff] %v858_v30 }
 0x778   :  { %1190 = shalt.err (!%p1187_p8)
}
 0x779   :  { %s1191_s6 = scalar_lea.hbm %s1502_s7, 256 }
 0x77a   :  { %p1192_p9 = scmp.ne.s32.totalorder %s1502_s7, %s1191_s6  ;;  %p1195_p10 = scmp.lt.u32.totalorder %s1191_s6, %s1502_s7 }
 0x77c   :  { %p1197_p11 = pnand %p1195_p10, %p1192_p9 }
 0x77e   :  { %1200 = shalt.err (!%p1197_p11)
}
 0x77f   :  { %884 = dma.vmem_to_hbm [thread:$0]  %s879_s15, 256, %s1502_s7, [#allocation4], %s1211_s17, %s1211_s17, %s1212_s18  }
 0x780   :  { %1205 = dma.done.wait [#allocation4], 256  }
 0x781   :  { %1206 = vsyncadd [#allocation4], 4294967040 }
 0x782   :  { %1207 = dma.done.wait [#allocation10], 64  }
 0x783   :  { %1208 = vsyncadd [#allocation10], 4294967232 }
 0x784   :  { %901 = vsyncpa [#allocation3], 1 }
 0x785   :  { %902 = vsyncpa [#allocation6], 1 }
 0x786   :  { %903 = vsyncpa [#allocation4], 1 }
 0x787   :  { %904 = vsyncpa [#allocation10], 1 }

</bundles_post_ra>
